<compile_context>
chip_gen: v7x
topology: tpu7x:2x2x1
jax: 0.10.0
libtpu: 0.0.40
codegen_flags: <defaults>
</compile_context>

<pallas_src>
import jax
import jax.numpy as jnp
from jax.experimental import pallas as pl
from jax.experimental.pallas import tpu as pltpu

KH = KW = 3          # conv kernel size, padding=1, stride=1
COUT_PAD = 128       # lane-dense output channel padding (multiple of 128)


def matmul_epilogue_kernel(p_ref, w_ref, b_ref, o_ref):
    """Pure MXU matmul + fused epilogue.

    p_ref: (TM, KPAD)        im2col patches tile (K zero-padded to 128-multiple)
    w_ref: (KPAD, COUT_PAD)  flattened conv weights (K and Cout zero-padded)
    b_ref: (1, COUT_PAD)     bias (zero-padded)
    o_ref: (TM, COUT_PAD)    lane-dense output tile
    """
    acc = jnp.dot(p_ref[...], w_ref[...], preferred_element_type=jnp.float32)
    v1 = acc + b_ref[...]                 # bias
    v2 = jnp.maximum(v1, 0.0)             # relu
    v5 = jnp.clip(v2 + 3.0, 0.0, 6.0)     # (v2+3).clamp(0).clamp(max=6)
    o_ref[...] = (v5 * (v2 + 1.0)).astype(o_ref.dtype)   # v2*v5 + v5


def model_forward(x_nchw, w_oihw, b):
    """x_nchw: (N, Cin, H, W) f32 -> (N, Cout, H, W) f32."""
    N, Cin, H, W = x_nchw.shape
    Cout = w_oihw.shape[0]
    K = KH * KW * Cin
    KPAD = pl.cdiv(K, 128) * 128          # 288 -> 384: no masked MXU K pass

    # ---- XLA-side im2col (data movement only; the matmul stays in Pallas) ----
    x_nhwc = jnp.transpose(x_nchw, (0, 2, 3, 1))
    xp = jnp.pad(x_nhwc, ((0, 0), (1, 1), (1, 1), (0, 0)))          # pad=1
    taps = [xp[:, kh:kh + H, kw:kw + W, :]
            for kh in range(KH) for kw in range(KW)]                # (kh,kw,cin)
    patches = jnp.concatenate(taps, axis=-1).reshape(N * H * W, K)
    patches = jnp.pad(patches, ((0, 0), (0, KPAD - K)))

    # Weights OIHW -> (KH*KW*Cin, Cout), same (kh,kw,cin) ordering as patches.
    w_hwio = jnp.transpose(w_oihw, (2, 3, 1, 0))                    # (KH,KW,Cin,Cout)
    w_flat = jnp.pad(w_hwio.reshape(K, Cout),
                     ((0, KPAD - K), (0, COUT_PAD - Cout)))
    b_pad = jnp.pad(b, (0, COUT_PAD - Cout)).reshape(1, COUT_PAD)

    # ---- tiling: 2-way "parallel" split over M (v7x megacore), else 1 tile ----
    M = N * H * W
    num_tiles = 2 if (M % 2 == 0 and (M // 2) % 8 == 0) else 1
    TM = M // num_tiles

    out_flat = pl.pallas_call(
        matmul_epilogue_kernel,
        out_shape=jax.ShapeDtypeStruct((M, COUT_PAD), jnp.float32),
        grid_spec=pltpu.PrefetchScalarGridSpec(
            num_scalar_prefetch=0,
            grid=(num_tiles,),
            in_specs=[
                pl.BlockSpec((TM, KPAD), lambda m: (m, 0)),
                pl.BlockSpec((KPAD, COUT_PAD), lambda m: (0, 0)),
                pl.BlockSpec((1, COUT_PAD), lambda m: (0, 0)),
            ],
            out_specs=pl.BlockSpec((TM, COUT_PAD), lambda m: (m, 0)),
        ),
        compiler_params=pltpu.CompilerParams(
            dimension_semantics=("parallel",)),
    )(patches, w_flat, b_pad)

    # Drop padded channels and return to NCHW (fuses into one small XLA op).
    # TODO(synk): at large H/W, emit the final layout from the kernel to avoid
    # the 128-lane write amplification; negligible at 16x16.
    out_nhwc = out_flat.reshape(N, H, W, COUT_PAD)[..., :Cout]
    return jnp.transpose(out_nhwc, (0, 3, 1, 2))


def reference_forward(x_nchw, w_oihw, b):
    """Pure-JAX reference of the PyTorch module forward."""
    v1 = jax.lax.conv_general_dilated(
        x_nchw, w_oihw, window_strides=(1, 1), padding=((1, 1), (1, 1)),
        dimension_numbers=("NCHW", "OIHW", "NCHW"))
    v1 = v1 + b.reshape(1, -1, 1, 1)
    v2 = jnp.maximum(v1, 0.0)
    v5 = jnp.clip(v2 + 3.0, 0.0, 6.0)
    return v2 * v5 + v5


if __name__ == "__main__":
    key = jax.random.PRNGKey(0)
    k_x, k_w, k_b = jax.random.split(key, 3)

    N, Cin, H, W = 2, 32, 16, 16   # in_channels fixed at 32 by the module
    Cout = 15

    x = jax.random.normal(k_x, (N, Cin, H, W), dtype=jnp.float32)
    # Deterministic synthetic Conv2d(32, 15, 3) parameters.
    fan_in = Cin * KH * KW
    bound = 1.0 / (fan_in ** 0.5)
    w = jax.random.uniform(k_w, (Cout, Cin, KH, KW), jnp.float32, -bound, bound)
    b = jax.random.uniform(k_b, (Cout,), jnp.float32, -bound, bound)

    fwd = jax.jit(model_forward)
    out = jax.block_until_ready(fwd(x, w, b))
    ref = jax.block_until_ready(reference_forward(x, w, b))

    assert out.shape == (N, Cout, H, W), out.shape
    assert jnp.allclose(out, ref, atol=1e-4, rtol=1e-4), float(
        jnp.max(jnp.abs(out - ref)))
    print("KERNEL_OK")
</pallas_src>

<mosaic_0001>
module attributes {stable_mosaic.version = 11 : i64} {
  func.func @matmul_epilogue_kernel(%arg0: i32, %arg1: memref<256x384xf32, #tpu.memory_space<vmem>>, %arg2: memref<384x128xf32, #tpu.memory_space<vmem>>, %arg3: memref<1x128xf32, #tpu.memory_space<vmem>>, %arg4: memref<256x128xf32, #tpu.memory_space<vmem>>) attributes {dimension_semantics = [#tpu.dimension_semantics<parallel>], iteration_bounds = array<i64: 2>, scalar_prefetch = 0 : i64, scratch_operands = 0 : i64, tpu.core_type = #tpu.core_type<tc>, window_params = [{transform_indices = @transform_0, window_bounds = array<i64: 256, 384>}, {pipeline_mode = #tpu.pipeline_mode<synchronous>, transform_indices = @transform_1, window_bounds = array<i64: 384, 128>}, {pipeline_mode = #tpu.pipeline_mode<synchronous>, transform_indices = @transform_2, window_bounds = array<i64: 1, 128>}, {transform_indices = @transform_3, window_bounds = array<i64: 256, 128>}]} {
    %c0 = arith.constant 0 : index
    %c0_0 = arith.constant 0 : index
    %0 = vector.load %arg1[%c0, %c0_0] : memref<256x384xf32, #tpu.memory_space<vmem>>, vector<256x384xf32>
    %c0_1 = arith.constant 0 : index
    %c0_2 = arith.constant 0 : index
    %1 = vector.load %arg2[%c0_1, %c0_2] : memref<384x128xf32, #tpu.memory_space<vmem>>, vector<384x128xf32>
    %cst = arith.constant dense<0.000000e+00> : vector<256x128xf32>
    %2 = tpu.matmul %0, %1, %cst {dimension_numbers = #tpu.dot_dimension_numbers<[1], [0], [0], [1], [0, 0, 1, 1], [], []>} : vector<256x384xf32>, vector<384x128xf32>, vector<256x128xf32> -> vector<256x128xf32>
    %c0_3 = arith.constant 0 : index
    %c0_4 = arith.constant 0 : index
    %3 = vector.load %arg3[%c0_3, %c0_4] : memref<1x128xf32, #tpu.memory_space<vmem>>, vector<1x128xf32>
    %4 = vector.broadcast %3 : vector<1x128xf32> to vector<256x128xf32>
    %5 = arith.addf %2, %4 : vector<256x128xf32>
    %cst_5 = arith.constant 0.000000e+00 : f32
    %6 = vector.broadcast %cst_5 : f32 to vector<256x128xf32>
    %7 = arith.maximumf %5, %6 : vector<256x128xf32>
    %cst_6 = arith.constant 3.000000e+00 : f32
    %8 = vector.broadcast %cst_6 : f32 to vector<256x128xf32>
    %9 = arith.addf %7, %8 : vector<256x128xf32>
    %cst_7 = arith.constant 0.000000e+00 : f32
    %cst_8 = arith.constant 6.000000e+00 : f32
    %10 = vector.broadcast %cst_7 : f32 to vector<256x128xf32>
    %11 = arith.maximumf %10, %9 : vector<256x128xf32>
    %12 = vector.broadcast %cst_8 : f32 to vector<256x128xf32>
    %13 = arith.minimumf %12, %11 : vector<256x128xf32>
    %cst_9 = arith.constant 1.000000e+00 : f32
    %14 = vector.broadcast %cst_9 : f32 to vector<256x128xf32>
    %15 = arith.addf %7, %14 : vector<256x128xf32>
    %16 = arith.mulf %13, %15 : vector<256x128xf32>
    %c0_10 = arith.constant 0 : index
    %c0_11 = arith.constant 0 : index
    %17 = vector.load %arg4[%c0_10, %c0_11] : memref<256x128xf32, #tpu.memory_space<vmem>>, vector<256x128xf32>
    tpu.vector_store %arg4[%c0_10, %c0_11], %16 {strides = array<i32>} : memref<256x128xf32, #tpu.memory_space<vmem>>, vector<256x128xf32>,
    return
  }
  func.func @transform_0(%arg0: i32) -> (i32, i32) {
    %c0_i32 = arith.constant 0 : i32
    %c0_i32_0 = arith.constant 0 : i32
    return %arg0, %c0_i32 : i32, i32
  }
  func.func @transform_1(%arg0: i32) -> (i32, i32) {
    %c0_i32 = arith.constant 0 : i32
    %c0_i32_0 = arith.constant 0 : i32
    %c0_i32_1 = arith.constant 0 : i32
    return %c0_i32, %c0_i32_0 : i32, i32
  }
  func.func @transform_2(%arg0: i32) -> (i32, i32) {
    %c0_i32 = arith.constant 0 : i32
    %c0_i32_0 = arith.constant 0 : i32
    %c0_i32_1 = arith.constant 0 : i32
    return %c0_i32, %c0_i32_0 : i32, i32
  }
  func.func @transform_3(%arg0: i32) -> (i32, i32) {
    %c0_i32 = arith.constant 0 : i32
    %c0_i32_0 = arith.constant 0 : i32
    return %arg0, %c0_i32 : i32, i32
  }
}

</mosaic_0001>

<bundles_post_ra>
// kernel: model_forward.1
= control target key start
LH: loop header
LB: loop body
LE: loop exit
PB: predicated region body
PF: predicated region fallthrough
CT: control target
= control target key end

     0   :  { %s1349_s12 = smov 0   ;;  %s1757_s0 = inlined_call_operand.vmem [shape: f32[512,384], index: 0, kind: input, shape index: {}]   ;;  %s1758_s1 = inlined_call_operand.vmem [shape: f32[384,128], index: 1, kind: input, shape index: {}]   ;;  %s1759_s2 = inlined_call_operand.vmem [shape: f32[1,128], index: 2, kind: input, shape index: {}]   ;;  %s1760_s3 = inlined_call_operand.vmem [shape: f32[512,128], index: 3, kind: output, shape index: {}]  }
   0x1 LB: > { %s1058_s13 = sadd.s32 4294967295, %s1326_s12   ;;  %p1062_p0 = scmp.ge.s32.totalorder %s1326_s12, 1  ;;  %s1326_s12 = sphi %s1349_s12, %s13_s12  }
   0x2   : > { %p139_p1 = scmp.lt.s32.totalorder %s1326_s12, 3 }
   0x4   : > { %p140_p2 = pnand %p1062_p0, %p139_p1 }
   0x5   : > { %v273_v0 = vld [vmem:[%s1758_s1] sm:$0xff] (!%p140_p2)  ;;  %v274_v1 = vld [vmem:[%s1758_s1 + $0x8] sm:$0xff] (!%p140_p2)  ;;  %v275_v2 = vld [vmem:[%s1758_s1 + $0x10] sm:$0xff] (!%p140_p2)  ;;  %s1063_s20 = sshll.u32 (!%p140_p2), %s1058_s13, 5  ;;  %v1328_v3 = vmov (!%p140_p2), 0.0|0.0  }
   0x6   : > { %143 = sbr.rel (%p140_p2) target bundleno = 395 (0x18b), region = 32  ;;  %1198 = vmatprep.subr.bf16.mxu0 (!%p140_p2), %v1328_v3  ;;  %1278 = vmatprep.subr.bf16.mxu1 (!%p140_p2), %v1328_v3  ;;  %v1199_v4 = vpack.c.bf16 (!%p140_p2), %v274_v1, %v273_v0  ;;  %v276_v5 = vld [vmem:[%s1758_s1 + $0x18] sm:$0xff] (!%p140_p2)  ;;  %p165_p3 = scmp.lt.s32.totalorder (!%p140_p2), %s1063_s20, 63  ;;  %v277_v7 = vld [vmem:[%s1758_s1 + $0x20] sm:$0xff] (!%p140_p2)  ;;  %v278_v8 = vld [vmem:[%s1758_s1 + $0x28] sm:$0xff] (!%p140_p2) }
   0x7   : > { %v1202_v6 = vpack.c.bf16 (!%p140_p2), %v276_v5, %v275_v2  ;;  %v1205_v9 = vpack.c.bf16 (!%p140_p2), %v278_v8, %v277_v7  ;;  %v279_v10 = vld [vmem:[%s1758_s1 + $0x30] sm:$0xff] (!%p140_p2)  ;;  %v280_v11 = vld [vmem:[%s1758_s1 + $0x38] sm:$0xff] (!%p140_p2)  ;;  %v281_v15 = vld [vmem:[%s1758_s1 + $0x40] sm:$0xff] (!%p140_p2) }
   0x8   : > { %1200 = vmatpush1.bf16.msra.mxu0 (!%p140_p2), %v1199_v4  ;;  %1294 = vmatpush1.bf16.msra.mxu1 (!%p140_p2), %v1199_v4  ;;  %v1208_v13 = vpack.c.bf16 (!%p140_p2), %v280_v11, %v279_v10  ;;  %v282_v16 = vld [vmem:[%s1758_s1 + $0x48] sm:$0xff] (!%p140_p2)  ;;  %v283_v18 = vld [vmem:[%s1758_s1 + $0x50] sm:$0xff] (!%p140_p2)  ;;  %v284_v19 = vld [vmem:[%s1758_s1 + $0x58] sm:$0xff] (!%p140_p2) }
   0x9   : > { %1201 = vmatprep.subr.bf16.mxu0 (!%p140_p2), %v1328_v3  ;;  %1279 = vmatprep.subr.bf16.mxu1 (!%p140_p2), %v1328_v3  ;;  %v1211_v17 = vpack.c.bf16 (!%p140_p2), %v282_v16, %v281_v15  ;;  %v1214_v20 = vpack.c.bf16 (!%p140_p2), %v284_v19, %v283_v18  ;;  %v285_v21 = vld [vmem:[%s1758_s1 + $0x60] sm:$0xff] (!%p140_p2)  ;;  %v286_v22 = vld [vmem:[%s1758_s1 + $0x68] sm:$0xff] (!%p140_p2)  ;;  %v287_v24 = vld [vmem:[%s1758_s1 + $0x70] sm:$0xff] (!%p140_p2) }
   0xa   : > { %v1217_v23 = vpack.c.bf16 (!%p140_p2), %v286_v22, %v285_v21  ;;  %v288_v25 = vld [vmem:[%s1758_s1 + $0x78] sm:$0xff] (!%p140_p2)  ;;  %v289_v27 = vld [vmem:[%s1758_s1 + $0x80] sm:$0xff] (!%p140_p2)  ;;  %v290_v28 = vld [vmem:[%s1758_s1 + $0x88] sm:$0xff] (!%p140_p2) }
   0xb   : > { %v1220_v26 = vpack.c.bf16 (!%p140_p2), %v288_v25, %v287_v24  ;;  %v1223_v29 = vpack.c.bf16 (!%p140_p2), %v290_v28, %v289_v27  ;;  %v291_v30 = vld [vmem:[%s1758_s1 + $0x90] sm:$0xff] (!%p140_p2)  ;;  %v292_v31 = vld [vmem:[%s1758_s1 + $0x98] sm:$0xff] (!%p140_p2)  ;;  %v293_v33 = vld [vmem:[%s1758_s1 + $0xa0] sm:$0xff] (!%p140_p2) }
   0xc   : > { %1203 = vmatpush1.bf16.msra.mxu0 (!%p140_p2), %v1202_v6  ;;  %1295 = vmatpush1.bf16.msra.mxu1 (!%p140_p2), %v1202_v6  ;;  %v1226_v32 = vpack.c.bf16 (!%p140_p2), %v292_v31, %v291_v30  ;;  %v294_v34 = vld [vmem:[%s1758_s1 + $0xa8] sm:$0xff] (!%p140_p2)  ;;  %v295_v36 = vld [vmem:[%s1758_s1 + $0xb0] sm:$0xff] (!%p140_p2)  ;;  %v296_v37 = vld [vmem:[%s1758_s1 + $0xb8] sm:$0xff] (!%p140_p2) }
   0xd   : > { %s1762_s20 = smov (!%p165_p3, %s1063_s20), 63  ;;  %1204 = vmatprep.subr.bf16.mxu0 %v1328_v3  ;;  %1280 = vmatprep.subr.bf16.mxu1 %v1328_v3  ;;  %v1229_v35 = vpack.c.bf16 %v294_v34, %v293_v33  ;;  %v1232_v38 = vpack.c.bf16 %v296_v37, %v295_v36  ;;  %v297_v39 = vld [vmem:[%s1758_s1 + $0xc0] sm:$0xff]  ;;  %v298_v40 = vld [vmem:[%s1758_s1 + $0xc8] sm:$0xff]  ;;  %v299_v42 = vld [vmem:[%s1758_s1 + $0xd0] sm:$0xff] }
   0xe   : > { %s1310_s27 = smul.u32 24, %s1762_s20  ;;  %v1235_v41 = vpack.c.bf16 %v298_v40, %v297_v39  ;;  %v300_v43 = vld [vmem:[%s1758_s1 + $0xd8] sm:$0xff]  ;;  %v301_v45 = vld [vmem:[%s1758_s1 + $0xe0] sm:$0xff]  ;;  %v302_v46 = vld [vmem:[%s1758_s1 + $0xe8] sm:$0xff]  ;;  %s1066_s18 = sshll.u32 %s1762_s20, 3 }
   0xf   : > { %v1238_v44 = vpack.c.bf16 %v300_v43, %v299_v42  ;;  %v1241_v47 = vpack.c.bf16 %v302_v46, %v301_v45  ;;  %v303_v48 = vld [vmem:[%s1758_s1 + $0xf0] sm:$0xff]  ;;  %v304_v49 = vld [vmem:[%s1758_s1 + $0xf8] sm:$0xff]  ;;  %v305_v50 = vld [vmem:[%s1758_s1 + $0x100] sm:$0xff]  ;;  %s1670_s22 = scalar_lea.vmem %s1760_s3, %s1066_s18 }
  0x10   : > { %s1385_s30 = scalar_lea.vmem %s1757_s0, %s1310_s27  ;;  %1206 = vmatpush1.bf16.msra.mxu0 %v1205_v9  ;;  %1296 = vmatpush1.bf16.msra.mxu1 %v1205_v9  ;;  %v306_v51 = vld [vmem:[%s1758_s1 + $0x108] sm:$0xff]  ;;  %v1244_v52 = vpack.c.bf16 %v304_v49, %v303_v48  ;;  %v307_v54 = vld [vmem:[%s1758_s1 + $0x110] sm:$0xff]  ;;  %v308_v55 = vld [vmem:[%s1758_s1 + $0x118] sm:$0xff] }
  0x11   : > { %v178_v12 = vld [vmem:[%s1385_s30 + $0x8] sm:$0xff]  ;;  %1207 = vmatprep.subr.bf16.mxu0 %v1328_v3  ;;  %1281 = vmatprep.subr.bf16.mxu1 %v1328_v3  ;;  %v1246_v53 = vpack.c.bf16 %v306_v51, %v305_v50  ;;  %v177_v56 = vld [vmem:[%s1385_s30] sm:$0xff]  ;;  %v1250_v59 = vpack.c.bf16 %v308_v55, %v307_v54  ;;  %v180_v63 = vld [vmem:[%s1385_s30 + $0x18] sm:$0xff] }
  0x12   : > { %v250_v14 = vld [vmem:[%s1385_s30 + $0x248] sm:$0xff]  ;;  %392 = vmatprep.mubr.f32.mxu0 %v178_v12  ;;  %v249_v57 = vld [vmem:[%s1385_s30 + $0x240] sm:$0xff]  ;;  %v252_v0 = vld [vmem:[%s1385_s30 + $0x258] sm:$0xff] }
  0x13   : > { %512 = vmatprep.mubr.f32.mxu1 %v250_v14  ;;  %v181_v58 = vld [vmem:[%s1385_s30 + $0x20] sm:$0xff]  ;;  %v310_v62 = vld [vmem:[%s1758_s1 + $0x128] sm:$0xff]  ;;  %v184_v1 = vld [vmem:[%s1385_s30 + $0x38] sm:$0xff] }
  0x14   : > { %1209 = vmatpush1.bf16.msra.mxu0 %v1208_v13  ;;  %1297 = vmatpush1.bf16.msra.mxu1 %v1208_v13  ;;  %v253_v60 = vld [vmem:[%s1385_s30 + $0x260] sm:$0xff]  ;;  %v311_v4 = vld [vmem:[%s1758_s1 + $0x130] sm:$0xff]  ;;  %v312_v5 = vld [vmem:[%s1758_s1 + $0x138] sm:$0xff] }
  0x15   : > { %1210 = vmatprep.subr.bf16.mxu0 %v1328_v3  ;;  %1282 = vmatprep.subr.bf16.mxu1 %v1328_v3  ;;  %v309_v61 = vld [vmem:[%s1758_s1 + $0x120] sm:$0xff]  ;;  %v183_v6 = vld [vmem:[%s1385_s30 + $0x30] sm:$0xff]  ;;  %v1258_v9 = vpack.c.bf16 %v312_v5, %v311_v4  ;;  %v314_v12 = vld [vmem:[%s1758_s1 + $0x148] sm:$0xff] }
  0x16   : > { %v1254_v2 = vpack.c.bf16 %v310_v62, %v309_v61  ;;  %v255_v7 = vld [vmem:[%s1385_s30 + $0x270] sm:$0xff]  ;;  %v313_v11 = vld [vmem:[%s1758_s1 + $0x140] sm:$0xff]  ;;  %v186_v13 = vld [vmem:[%s1385_s30 + $0x48] sm:$0xff] }
  0x17   : > { %v187_v8 = vld [vmem:[%s1385_s30 + $0x50] sm:$0xff]  ;;  %v258_v14 = vld [vmem:[%s1385_s30 + $0x288] sm:$0xff]  ;;  %v1262_v16 = vpack.c.bf16 %v314_v12, %v313_v11  ;;  %v316_v19 = vld [vmem:[%s1758_s1 + $0x158] sm:$0xff] }
  0x18   : > { %1212 = vmatpush1.bf16.msra.mxu0 %v1211_v17  ;;  %1298 = vmatpush1.bf16.msra.mxu1 %v1211_v17  ;;  %v259_v10 = vld [vmem:[%s1385_s30 + $0x290] sm:$0xff]  ;;  %v190_v15 = vld [vmem:[%s1385_s30 + $0x68] sm:$0xff]  ;;  %v261_v21 = vld [vmem:[%s1385_s30 + $0x2a0] sm:$0xff] }
  0x19   : > { %1213 = vmatprep.subr.bf16.mxu0 %v1328_v3  ;;  %1283 = vmatprep.subr.bf16.mxu1 %v1328_v3  ;;  %v262_v17 = vld [vmem:[%s1385_s30 + $0x2a8] sm:$0xff]  ;;  %v315_v18 = vld [vmem:[%s1758_s1 + $0x150] sm:$0xff]  ;;  %v193_v22 = vld [vmem:[%s1385_s30 + $0x80] sm:$0xff] }
  0x1a   : > { %v265_v24 = vld [vmem:[%s1385_s30 + $0x2c0] sm:$0xff]  ;;  %v192_v27 = vld [vmem:[%s1385_s30 + $0x78] sm:$0xff]  ;;  %v195_v34 = vld [vmem:[%s1385_s30 + $0x90] sm:$0xff] }
  0x1b   : > { %v317_v25 = vld [vmem:[%s1758_s1 + $0x160] sm:$0xff]  ;;  %v264_v28 = vld [vmem:[%s1385_s30 + $0x2b8] sm:$0xff]  ;;  %v199_v36 = vld [vmem:[%s1385_s30 + $0xb0] sm:$0xff] }
  0x1c   : > { %1215 = vmatpush1.bf16.msra.mxu0 %v1214_v20  ;;  %1299 = vmatpush1.bf16.msra.mxu1 %v1214_v20  ;;  %v189_v20 = vld [vmem:[%s1385_s30 + $0x60] sm:$0xff]  ;;  %v268_v31 = vld [vmem:[%s1385_s30 + $0x2d8] sm:$0xff]  ;;  %v198_v39 = vld [vmem:[%s1385_s30 + $0xa8] sm:$0xff] }
  0x1d   : > { %1216 = vmatprep.subr.bf16.mxu0 %v1328_v3  ;;  %1284 = vmatprep.subr.bf16.mxu1 %v1328_v3  ;;  %v320_v33 = vld [vmem:[%s1758_s1 + $0x178] sm:$0xff]  ;;  %v270_v40 = vld [vmem:[%s1385_s30 + $0x2e8] sm:$0xff]  ;;  %v179_v42 = vld [vmem:[%s1385_s30 + $0x10] sm:$0xff] }
  0x1e   : > { %v201_v43 = vld [vmem:[%s1385_s30 + $0xc0] sm:$0xff]  ;;  %v188_v48 = vld [vmem:[%s1385_s30 + $0x58] sm:$0xff]  ;;  %v191_v50 = vld [vmem:[%s1385_s30 + $0x70] sm:$0xff] }
  0x1f   : > { %v205_v45 = vld [vmem:[%s1385_s30 + $0xe0] sm:$0xff]  ;;  %v208_v49 = vld [vmem:[%s1385_s30 + $0xf8] sm:$0xff]  ;;  %v207_v51 = vld [vmem:[%s1385_s30 + $0xf0] sm:$0xff] }
  0x20   : > { %1218 = vmatpush1.bf16.msra.mxu0 %v1217_v23  ;;  %1300 = vmatpush1.bf16.msra.mxu1 %v1217_v23  ;;  %v1266_v23 = vpack.c.bf16 %v316_v19, %v315_v18  ;;  %v185_v46 = vld [vmem:[%s1385_s30 + $0x40] sm:$0xff]  ;;  %v210_v55 = vld [vmem:[%s1385_s30 + $0x108] sm:$0xff]  ;;  %v223_v5 = vld [vmem:[%s1385_s30 + $0x170] sm:$0xff] }
  0x21   : > { %1219 = vmatprep.subr.bf16.mxu0 %v1328_v3  ;;  %1285 = vmatprep.subr.bf16.mxu1 %v1328_v3  ;;  %v197_v54 = vld [vmem:[%s1385_s30 + $0xa0] sm:$0xff]  ;;  %v218_v4 = vld [vmem:[%s1385_s30 + $0x148] sm:$0xff]  ;;  %v239_v18 = vld [vmem:[%s1385_s30 + $0x1f0] sm:$0xff] }
  0x22   : > { %v217_v61 = vld [vmem:[%s1385_s30 + $0x140] sm:$0xff]  ;;  %v230_v12 = vld [vmem:[%s1385_s30 + $0x1a8] sm:$0xff]  ;;  %v231_v19 = vld [vmem:[%s1385_s30 + $0x1b0] sm:$0xff] }
  0x23   : > { %v209_v62 = vld [vmem:[%s1385_s30 + $0x100] sm:$0xff] }
  0x24   : > { %1221 = vmatpush1.bf16.msra.mxu0 %v1220_v26  ;;  %1301 = vmatpush1.bf16.msra.mxu1 %v1220_v26  ;;  %v318_v26 = vld [vmem:[%s1758_s1 + $0x168] sm:$0xff]  ;;  %v225_v11 = vld [vmem:[%s1385_s30 + $0x180] sm:$0xff] }
  0x25   : > { %1222 = vmatprep.subr.bf16.mxu0 %v1328_v3  ;;  %1286 = vmatprep.subr.bf16.mxu1 %v1328_v3  ;;  %v1270_v30 = vpack.c.bf16 %v318_v26, %v317_v25  ;;  %v238_v25 = vld [vmem:[%s1385_s30 + $0x1e8] sm:$0xff]  ;;  %v251_v26 = vld [vmem:[%s1385_s30 + $0x250] sm:$0xff] }
  0x28   : > { %1224 = vmatpush1.bf16.msra.mxu0 %v1223_v29  ;;  %1302 = vmatpush1.bf16.msra.mxu1 %v1223_v29  ;;  %v196_v29 = vld [vmem:[%s1385_s30 + $0x98] sm:$0xff] }
  0x29   : > { %1225 = vmatprep.subr.bf16.mxu0 %v1328_v3  ;;  %1287 = vmatprep.subr.bf16.mxu1 %v1328_v3 }
  0x2c   : > { %1227 = vmatpush1.bf16.msra.mxu0 %v1226_v32  ;;  %1303 = vmatpush1.bf16.msra.mxu1 %v1226_v32  ;;  %v319_v32 = vld [vmem:[%s1758_s1 + $0x170] sm:$0xff] }
  0x2d   : > { %1228 = vmatprep.subr.bf16.mxu0 %v1328_v3  ;;  %1288 = vmatprep.subr.bf16.mxu1 %v1328_v3  ;;  %v1274_v37 = vpack.c.bf16 %v320_v33, %v319_v32  ;;  %v260_v32 = vld [vmem:[%s1385_s30 + $0x298] sm:$0xff] }
  0x2e   : > { %v244_v33 = vld [vmem:[%s1385_s30 + $0x218] sm:$0xff] }
  0x30   : > { %1230 = vmatpush1.bf16.msra.mxu0 %v1229_v35  ;;  %1304 = vmatpush1.bf16.msra.mxu1 %v1229_v35  ;;  %v267_v35 = vld [vmem:[%s1385_s30 + $0x2d0] sm:$0xff] }
  0x31   : > { %1231 = vmatprep.subr.bf16.mxu0 %v1328_v3  ;;  %1289 = vmatprep.subr.bf16.mxu1 %v1328_v3 }
  0x34   : > { %1233 = vmatpush1.bf16.msra.mxu0 %v1232_v38  ;;  %1305 = vmatpush1.bf16.msra.mxu1 %v1232_v38  ;;  %v271_v38 = vld [vmem:[%s1385_s30 + $0x2f0] sm:$0xff] }
  0x35   : > { %1234 = vmatprep.subr.bf16.mxu0 %v1328_v3  ;;  %1290 = vmatprep.subr.bf16.mxu1 %v1328_v3 }
  0x38   : > { %1236 = vmatpush1.bf16.msra.mxu0 %v1235_v41  ;;  %1306 = vmatpush1.bf16.msra.mxu1 %v1235_v41  ;;  %v202_v41 = vld [vmem:[%s1385_s30 + $0xc8] sm:$0xff] }
  0x39   : > { %1237 = vmatprep.subr.bf16.mxu0 %v1328_v3  ;;  %1291 = vmatprep.subr.bf16.mxu1 %v1328_v3 }
  0x3c   : > { %1239 = vmatpush1.bf16.msra.mxu0 %v1238_v44  ;;  %1307 = vmatpush1.bf16.msra.mxu1 %v1238_v44  ;;  %v182_v44 = vld [vmem:[%s1385_s30 + $0x28] sm:$0xff] }
  0x3d   : > { %1240 = vmatprep.subr.bf16.mxu0 %v1328_v3  ;;  %1292 = vmatprep.subr.bf16.mxu1 %v1328_v3 }
  0x40   : > { %1242 = vmatpush1.bf16.msra.mxu0 %v1241_v47  ;;  %1308 = vmatpush1.bf16.msra.mxu1 %v1241_v47  ;;  %v204_v47 = vld [vmem:[%s1385_s30 + $0xd8] sm:$0xff] }
  0x41   : > { %1243 = vmatprep.subr.bf16.mxu0 %v1328_v3  ;;  %1293 = vmatprep.subr.bf16.mxu1 %v1328_v3  ;;  %v256_v3 = vld [vmem:[%s1385_s30 + $0x278] sm:$0xff] }
  0x44   : > { %1245 = vmatpush1.bf16.msra.mxu0 %v1244_v52  ;;  %1309 = vmatpush1.bf16.msra.mxu1 %v1244_v52  ;;  %v194_v52 = vld [vmem:[%s1385_s30 + $0x88] sm:$0xff] }
  0x45   : > { %1247 = vmatprep.subr.bf16.mxu1 %v1246_v53 }
  0x47   : > { %393 = vmatmul.mubr.f32.vlgmr.msra.gmra.mrb[0].mxu0 %v177_v56  ;;  %513 = vmatmul.mubr.f32.vlgmr.msra.gmra.mrb[0].mxu1 %v249_v57  ;;  %v200_v56 = vld [vmem:[%s1385_s30 + $0xb8] sm:$0xff]  ;;  %v214_v57 = vld [vmem:[%s1385_s30 + $0x128] sm:$0xff] }
  0x48   : > { %1249 = vmatpush3.bf16.msra.mxu1 %v1246_v53  ;;  %397 = vmatprep.mubr.f32.mxu0 %v181_v58  ;;  %v211_v53 = vld [vmem:[%s1385_s30 + $0x110] sm:$0xff] }
  0x49   : > { %517 = vmatprep.mubr.f32.mxu1 %v253_v60  ;;  %1251 = vmatprep.subr.bf16.mxu1 %v1250_v59  ;;  %v203_v58 = vld [vmem:[%s1385_s30 + $0xd0] sm:$0xff]  ;;  %v206_v60 = vld [vmem:[%s1385_s30 + $0xe8] sm:$0xff] }
  0x4b   : > { %398 = vmatmul.mubr.f32.gmra.mrb[2].mxu0 %v180_v63  ;;  %518 = vmatmul.mubr.f32.gmra.mrb[2].mxu1 %v252_v0  ;;  %v216_v63 = vld [vmem:[%s1385_s30 + $0x138] sm:$0xff] }
  0x4c   : > { %1253 = vmatpush3.bf16.msra.mxu1 %v1250_v59  ;;  %402 = vmatprep.mubr.f32.mxu0 %v184_v1  ;;  %v213_v59 = vld [vmem:[%s1385_s30 + $0x120] sm:$0xff]  ;;  %v212_v0 = vld [vmem:[%s1385_s30 + $0x118] sm:$0xff] }
  0x4d   : > { %522 = vmatprep.mubr.f32.mxu1 %v256_v3  ;;  %1255 = vmatprep.subr.bf16.mxu1 %v1254_v2  ;;  %v220_v1 = vld [vmem:[%s1385_s30 + $0x158] sm:$0xff]  ;;  %v219_v3 = vld [vmem:[%s1385_s30 + $0x150] sm:$0xff] }
  0x4f   : > { %403 = vmatmul.mubr.f32.gmra.mrb[4].mxu0 %v183_v6  ;;  %523 = vmatmul.mubr.f32.gmra.mrb[4].mxu1 %v255_v7  ;;  %v221_v6 = vld [vmem:[%s1385_s30 + $0x160] sm:$0xff]  ;;  %v222_v7 = vld [vmem:[%s1385_s30 + $0x168] sm:$0xff] }
  0x50   : > { %1257 = vmatpush3.bf16.msra.mxu1 %v1254_v2  ;;  %407 = vmatprep.mubr.f32.mxu0 %v187_v8  ;;  %v215_v2 = vld [vmem:[%s1385_s30 + $0x130] sm:$0xff]  ;;  %v224_v8 = vld [vmem:[%s1385_s30 + $0x178] sm:$0xff] }
  0x51   : > { %527 = vmatprep.mubr.f32.mxu1 %v259_v10  ;;  %1259 = vmatprep.subr.bf16.mxu1 %v1258_v9  ;;  %v227_v10 = vld [vmem:[%s1385_s30 + $0x190] sm:$0xff] }
  0x53   : > { %408 = vmatmul.mubr.f32.gmra.mrb[6].mxu0 %v186_v13  ;;  %528 = vmatmul.mubr.f32.gmra.mrb[6].mxu1 %v258_v14  ;;  %v229_v13 = vld [vmem:[%s1385_s30 + $0x1a0] sm:$0xff] }
  0x54   : > { %1261 = vmatpush3.bf16.msra.mxu1 %v1258_v9  ;;  %412 = vmatprep.mubr.f32.mxu0 %v190_v15  ;;  %v226_v9 = vld [vmem:[%s1385_s30 + $0x188] sm:$0xff]  ;;  %v233_v14 = vld [vmem:[%s1385_s30 + $0x1c0] sm:$0xff]  ;;  %v228_v15 = vld [vmem:[%s1385_s30 + $0x198] sm:$0xff] }
  0x55   : > { %532 = vmatprep.mubr.f32.mxu1 %v262_v17  ;;  %1263 = vmatprep.subr.bf16.mxu1 %v1262_v16  ;;  %v232_v17 = vld [vmem:[%s1385_s30 + $0x1b8] sm:$0xff] }
  0x57   : > { %413 = vmatmul.mubr.f32.gmra.mrb[8].mxu0 %v189_v20  ;;  %533 = vmatmul.mubr.f32.gmra.mrb[8].mxu1 %v261_v21  ;;  %v242_v20 = vld [vmem:[%s1385_s30 + $0x208] sm:$0xff]  ;;  %v235_v21 = vld [vmem:[%s1385_s30 + $0x1d0] sm:$0xff] }
  0x58   : > { %1265 = vmatpush3.bf16.msra.mxu1 %v1262_v16  ;;  %417 = vmatprep.mubr.f32.mxu0 %v193_v22  ;;  %v236_v16 = vld [vmem:[%s1385_s30 + $0x1d8] sm:$0xff]  ;;  %v245_v22 = vld [vmem:[%s1385_s30 + $0x220] sm:$0xff] }
  0x59   : > { %537 = vmatprep.mubr.f32.mxu1 %v265_v24  ;;  %1267 = vmatprep.subr.bf16.mxu1 %v1266_v23  ;;  %v248_v24 = vld [vmem:[%s1385_s30 + $0x238] sm:$0xff] }
  0x5b   : > { %418 = vmatmul.mubr.f32.gmra.mrb[10].mxu0 %v192_v27  ;;  %538 = vmatmul.mubr.f32.gmra.mrb[10].mxu1 %v264_v28  ;;  %v237_v27 = vld [vmem:[%s1385_s30 + $0x1e0] sm:$0xff]  ;;  %v254_v28 = vld [vmem:[%s1385_s30 + $0x268] sm:$0xff] }
  0x5c   : > { %1269 = vmatpush3.bf16.msra.mxu1 %v1266_v23  ;;  %422 = vmatprep.mubr.f32.mxu0 %v196_v29  ;;  %v234_v23 = vld [vmem:[%s1385_s30 + $0x1c8] sm:$0xff]  ;;  %v241_v29 = vld [vmem:[%s1385_s30 + $0x200] sm:$0xff] }
  0x5d   : > { %542 = vmatprep.mubr.f32.mxu1 %v268_v31  ;;  %1271 = vmatprep.subr.bf16.mxu1 %v1270_v30  ;;  %v240_v31 = vld [vmem:[%s1385_s30 + $0x1f8] sm:$0xff] }
  0x5f   : > { %423 = vmatmul.mubr.f32.gmra.mrb[12].mxu0 %v195_v34  ;;  %543 = vmatmul.mubr.f32.gmra.mrb[12].mxu1 %v267_v35  ;;  %v263_v34 = vld [vmem:[%s1385_s30 + $0x2b0] sm:$0xff] }
  0x60   : > { %1273 = vmatpush3.bf16.msra.mxu1 %v1270_v30  ;;  %427 = vmatprep.mubr.f32.mxu0 %v199_v36  ;;  %v257_v30 = vld [vmem:[%s1385_s30 + $0x280] sm:$0xff]  ;;  %v243_v35 = vld [vmem:[%s1385_s30 + $0x210] sm:$0xff]  ;;  %v266_v36 = vld [vmem:[%s1385_s30 + $0x2c8] sm:$0xff] }
  0x61   : > { %547 = vmatprep.mubr.f32.mxu1 %v271_v38  ;;  %1275 = vmatprep.subr.bf16.mxu1 %v1274_v37  ;;  %v269_v38 = vld [vmem:[%s1385_s30 + $0x2e0] sm:$0xff] }
  0x63   : > { %428 = vmatmul.mubr.f32.gmra.mrb[14].mxu0 %v198_v39  ;;  %548 = vmatmul.mubr.f32.gmra.mrb[14].mxu1 %v270_v40  ;;  %v246_v39 = vld [vmem:[%s1385_s30 + $0x228] sm:$0xff]  ;;  %v272_v40 = vld [vmem:[%s1385_s30 + $0x2f8] sm:$0xff] }
  0x64   : > { %1277 = vmatpush3.bf16.msra.mxu1 %v1274_v37  ;;  %432 = vmatprep.mubr.f32.mxu0 %v202_v41  ;;  %v247_v37 = vld [vmem:[%s1385_s30 + $0x230] sm:$0xff] }
  0x65   : > { %1150 = vmatprep.mubr.f32.mxu1 %v179_v42 }
  0x67   : > { %433 = vmatmul.mubr.f32.gmra.mrb[16].mxu0 %v201_v43  ;;  %1151 = vmatmul.mubr.f32.vlgmr.msra.gmra.mrb[16].mxu1 %v182_v44 }
  0x68   : > { %437 = vmatprep.mubr.f32.mxu0 %v205_v45  ;;  %1153 = vmatprep.mubr.f32.mxu1 %v185_v46 }
  0x6b   : > { %438 = vmatmul.mubr.f32.gmra.mrb[18].mxu0 %v204_v47  ;;  %1154 = vmatmul.mubr.f32.gmra.mrb[18].mxu1 %v188_v48 }
  0x6c   : > { %442 = vmatprep.mubr.f32.mxu0 %v208_v49  ;;  %1156 = vmatprep.mubr.f32.mxu1 %v191_v50 }
  0x6f   : > { %443 = vmatmul.mubr.f32.gmra.mrb[20].mxu0 %v207_v51  ;;  %1157 = vmatmul.mubr.f32.gmra.mrb[20].mxu1 %v194_v52 }
  0x70   : > { %447 = vmatprep.mubr.f32.mxu0 %v211_v53  ;;  %1159 = vmatprep.mubr.f32.mxu1 %v197_v54 }
  0x73   : > { %448 = vmatmul.mubr.f32.gmra.mrb[22].mxu0 %v210_v55  ;;  %1160 = vmatmul.mubr.f32.gmra.mrb[22].mxu1 %v200_v56 }
  0x74   : > { %452 = vmatprep.mubr.f32.mxu0 %v214_v57  ;;  %1162 = vmatprep.mubr.f32.mxu1 %v203_v58 }
  0x77   : > { %453 = vmatmul.mubr.f32.gmra.mrb[24].mxu0 %v213_v59  ;;  %1163 = vmatmul.mubr.f32.gmra.mrb[24].mxu1 %v206_v60 }
  0x78   : > { %457 = vmatprep.mubr.f32.mxu0 %v217_v61  ;;  %1165 = vmatprep.mubr.f32.mxu1 %v209_v62 }
  0x7b   : > { %458 = vmatmul.mubr.f32.gmra.mrb[26].mxu0 %v216_v63  ;;  %1166 = vmatmul.mubr.f32.gmra.mrb[26].mxu1 %v212_v0 }
  0x7c   : > { %462 = vmatprep.mubr.f32.mxu0 %v220_v1  ;;  %1168 = vmatprep.mubr.f32.mxu1 %v215_v2 }
  0x7f   : > { %463 = vmatmul.mubr.f32.gmra.mrb[28].mxu0 %v219_v3  ;;  %1169 = vmatmul.mubr.f32.gmra.mrb[28].mxu1 %v218_v4 }
  0x80   : > { %467 = vmatprep.mubr.f32.mxu0 %v223_v5  ;;  %1171 = vmatprep.mubr.f32.mxu1 %v221_v6 }
  0x83   : > { %468 = vmatmul.mubr.f32.gmra.mrb[30].mxu0 %v222_v7  ;;  %1172 = vmatmul.mubr.f32.gmra.mrb[30].mxu1 %v224_v8  ;;  %v1656_v7 = vld [vmem:[%s1759_s2] ss:$0 sm:$0xff] }
  0x84   : > { %472 = vmatprep.mubr.f32.mxu0 %v226_v9  ;;  %1174 = vmatprep.mubr.f32.mxu1 %v227_v10 }
  0x87   : > { %473 = vmatmul.mubr.f32.gmra.mrb[32].mxu0 %v225_v11  ;;  %1175 = vmatmul.mubr.f32.gmra.mrb[32].mxu1 %v230_v12 }
  0x88   : > { %477 = vmatprep.mubr.f32.mxu0 %v229_v13  ;;  %1177 = vmatprep.mubr.f32.mxu1 %v233_v14 }
  0x8b   : > { %478 = vmatmul.mubr.f32.gmra.mrb[34].mxu0 %v228_v15  ;;  %1178 = vmatmul.mubr.f32.gmra.mrb[34].mxu1 %v236_v16 }
  0x8c   : > { %482 = vmatprep.mubr.f32.mxu0 %v232_v17  ;;  %1180 = vmatprep.mubr.f32.mxu1 %v239_v18 }
  0x8f   : > { %483 = vmatmul.mubr.f32.gmra.mrb[36].mxu0 %v231_v19  ;;  %1181 = vmatmul.mubr.f32.gmra.mrb[36].mxu1 %v242_v20 }
  0x90   : > { %487 = vmatprep.mubr.f32.mxu0 %v235_v21  ;;  %1183 = vmatprep.mubr.f32.mxu1 %v245_v22 }
  0x93   : > { %488 = vmatmul.mubr.f32.gmra.mrb[38].mxu0 %v234_v23  ;;  %1184 = vmatmul.mubr.f32.gmra.mrb[38].mxu1 %v248_v24 }
  0x94   : > { %492 = vmatprep.mubr.f32.mxu0 %v238_v25  ;;  %1186 = vmatprep.mubr.f32.mxu1 %v251_v26 }
  0x97   : > { %493 = vmatmul.mubr.f32.gmra.mrb[40].mxu0 %v237_v27  ;;  %1187 = vmatmul.mubr.f32.gmra.mrb[40].mxu1 %v254_v28 }
  0x98   : > { %497 = vmatprep.mubr.f32.mxu0 %v241_v29  ;;  %1189 = vmatprep.mubr.f32.mxu1 %v257_v30 }
  0x9b   : > { %498 = vmatmul.mubr.f32.gmra.mrb[42].mxu0 %v240_v31  ;;  %1190 = vmatmul.mubr.f32.gmra.mrb[42].mxu1 %v260_v32 }
  0x9c   : > { %502 = vmatprep.mubr.f32.mxu0 %v244_v33  ;;  %1192 = vmatprep.mubr.f32.mxu1 %v263_v34 }
  0x9f   : > { %503 = vmatmul.mubr.f32.gmra.mrb[44].mxu0 %v243_v35  ;;  %1193 = vmatmul.mubr.f32.gmra.mrb[44].mxu1 %v266_v36 }
  0xa0   : > { %507 = vmatprep.mubr.f32.mxu0 %v247_v37  ;;  %1195 = vmatprep.mubr.f32.mxu1 %v269_v38 }
  0xa3   : > { %508 = vmatmul.mubr.f32.gmra.mrb[46].mxu0 %v246_v39  ;;  %1196 = vmatmul.mubr.f32.gmra.mrb[46].mxu1 %v272_v40 }
 0x11a   : > { %v394_v41 = vpop.f32.mrb[0].mxu0  ;;  %v1637_v42 = vpop.f32.mrb[0].mxu1 }
 0x11b   : > { %v396_v43 = vpop.f32.mrb[1].mxu0  ;;  %v516_v44 = vpop.f32.mrb[1].mxu1  ;;  %v395_v11 = vadd.f32 %v1656_v7, %v394_v41 }
 0x11e   : > { %v399_v45 = vpop.f32.mrb[2].mxu0  ;;  %v1639_v46 = vpop.f32.mrb[2].mxu1 }
 0x11f   : > { %v401_v47 = vpop.f32.mrb[3].mxu0  ;;  %v521_v48 = vpop.f32.mrb[3].mxu1  ;;  %v400_v10 = vadd.f32 %v1656_v7, %v399_v45 }
 0x122   : > { %v404_v49 = vpop.f32.mrb[4].mxu0  ;;  %v1641_v50 = vpop.f32.mrb[4].mxu1 }
 0x123   : > { %v406_v51 = vpop.f32.mrb[5].mxu0  ;;  %v526_v52 = vpop.f32.mrb[5].mxu1  ;;  %v405_v20 = vadd.f32 %v1656_v7, %v404_v49 }
 0x126   : > { %v409_v53 = vpop.f32.mrb[6].mxu0  ;;  %v1643_v54 = vpop.f32.mrb[6].mxu1 }
 0x127   : > { %v411_v55 = vpop.f32.mrb[7].mxu0  ;;  %v531_v56 = vpop.f32.mrb[7].mxu1  ;;  %v410_v18 = vadd.f32 %v1656_v7, %v409_v53 }
 0x12a   : > { %v414_v57 = vpop.f32.mrb[8].mxu0  ;;  %v1645_v58 = vpop.f32.mrb[8].mxu1 }
 0x12b   : > { %v416_v59 = vpop.f32.mrb[9].mxu0  ;;  %v536_v60 = vpop.f32.mrb[9].mxu1  ;;  %v415_v37 = vadd.f32 %v1656_v7, %v414_v57 }
 0x12e   : > { %v419_v61 = vpop.f32.mrb[10].mxu0  ;;  %v1647_v62 = vpop.f32.mrb[10].mxu1 }
 0x12f   : > { %v421_v63 = vpop.f32.mrb[11].mxu0  ;;  %v541_v0 = vpop.f32.mrb[11].mxu1  ;;  %v420_v32 = vadd.f32 %v1656_v7, %v419_v61 }
 0x132   : > { %v424_v1 = vpop.f32.mrb[12].mxu0  ;;  %v1649_v2 = vpop.f32.mrb[12].mxu1 }
 0x133   : > { %v426_v3 = vpop.f32.mrb[13].mxu0  ;;  %v546_v4 = vpop.f32.mrb[13].mxu1  ;;  %v425_v55 = vadd.f32 %v1656_v7, %v424_v1 }
 0x136   : > { %v429_v5 = vpop.f32.mrb[14].mxu0  ;;  %v1651_v6 = vpop.f32.mrb[14].mxu1 }
 0x137   : > { %v431_v8 = vpop.f32.mrb[15].mxu0  ;;  %v551_v9 = vpop.f32.mrb[15].mxu1  ;;  %v430_v49 = vadd.f32 %v1656_v7, %v429_v5 }
 0x13a   : > { %v1660_v12 = vpop.f32.mrb[16].mxu0  ;;  %v1152_v13 = vpop.f32.mrb[16].mxu1 }
 0x13b   : > { %v625_v14 = vadd.f32 %v1152_v13, %v400_v10  ;;  %v436_v15 = vpop.f32.mrb[17].mxu0  ;;  %v619_v16 = vpop.f32.mrb[17].mxu1 }
 0x13c   : > { %v620_v17 = vadd.f32 %v619_v16, %v395_v11 }
 0x13d   : > { %v779_v19 = vmax.f32 %v625_v14, 0.0 }
 0x13e   : > { %v778_v21 = vmax.f32 %v620_v17, 0.0  ;;  %v439_v22 = vpop.f32.mrb[18].mxu0  ;;  %v1155_v23 = vpop.f32.mrb[18].mxu1 }
 0x13f   : > { %v811_v24 = vadd.f32 3.0, %v779_v19  ;;  %v635_v25 = vadd.f32 %v1155_v23, %v410_v18  ;;  %v441_v26 = vpop.f32.mrb[19].mxu0  ;;  %v629_v27 = vpop.f32.mrb[19].mxu1  ;;  %v907_v39 = vadd.f32 1.0, %v779_v19  ;;  %v440_v16 = vadd.f32 %v1656_v7, %v439_v22 }
 0x140   : > { %v810_v28 = vadd.f32 3.0, %v778_v21  ;;  %v630_v29 = vadd.f32 %v629_v27, %v405_v20  ;;  %v906_v45 = vadd.f32 1.0, %v778_v21  ;;  %v435_v23 = vadd.f32 %v1656_v7, %v1660_v12 }
 0x141   : > { %v843_v30 = vmax.f32 %v811_v24, 0.0  ;;  %v781_v31 = vmax.f32 %v635_v25, 0.0 }
 0x142   : > { %v842_v33 = vmax.f32 %v810_v28, 0.0  ;;  %v780_v34 = vmax.f32 %v630_v29, 0.0  ;;  %v444_v35 = vpop.f32.mrb[20].mxu0  ;;  %v1158_v36 = vpop.f32.mrb[20].mxu1 }
 0x143   : > { %v875_v38 = vmin.f32 %v843_v30, 6.0  ;;  %v813_v40 = vadd.f32 3.0, %v781_v31  ;;  %v446_v41 = vpop.f32.mrb[21].mxu0  ;;  %v639_v43 = vpop.f32.mrb[21].mxu1  ;;  %v645_v48 = vadd.f32 %v1158_v36, %v420_v32  ;;  %v909_v0 = vadd.f32 1.0, %v781_v31 }
 0x144   : > { %v874_v44 = vmin.f32 %v842_v33, 6.0  ;;  %v812_v47 = vadd.f32 3.0, %v780_v34  ;;  %v640_v53 = vadd.f32 %v639_v43, %v415_v37  ;;  %v908_v10 = vadd.f32 1.0, %v780_v34 }
 0x145   : > { %v939_v51 = vmul.f32 %v907_v39, %v875_v38  ;;  %v845_v52 = vmax.f32 %v813_v40, 0.0  ;;  %v783_v59 = vmax.f32 %v645_v48, 0.0  ;;  %v445_v24 = vadd.f32 %v1656_v7, %v444_v35 }
 0x146   : > { %v938_v56 = vmul.f32 %v906_v45, %v874_v44  ;;  %v844_v57 = vmax.f32 %v812_v47, 0.0  ;;  %v449_v60 = vpop.f32.mrb[22].mxu0  ;;  %v1161_v61 = vpop.f32.mrb[22].mxu1  ;;  %v782_v3 = vmax.f32 %v640_v53, 0.0 }
 0x147   : > { %971 = vst [vmem:[%s1670_s22 + $0x8] sm:$0xff] %v939_v51  ;;  %v877_v63 = vmin.f32 %v845_v52, 6.0  ;;  %v655_v4 = vadd.f32 %v1161_v61, %v430_v49  ;;  %v451_v8 = vpop.f32.mrb[23].mxu0  ;;  %v649_v9 = vpop.f32.mrb[23].mxu1  ;;  %v815_v11 = vadd.f32 3.0, %v783_v59  ;;  %v911_v30 = vadd.f32 1.0, %v783_v59 }
 0x148   : > { %970 = vst [vmem:[%s1670_s22] sm:$0xff] %v938_v56  ;;  %v876_v5 = vmin.f32 %v844_v57, 6.0  ;;  %v650_v13 = vadd.f32 %v649_v9, %v425_v55  ;;  %v814_v1 = vadd.f32 3.0, %v782_v3  ;;  %v910_v33 = vadd.f32 1.0, %v782_v3 }
 0x149   : > { %v941_v14 = vmul.f32 %v909_v0, %v877_v63  ;;  %v785_v15 = vmax.f32 %v655_v4, 0.0  ;;  %v847_v18 = vmax.f32 %v815_v11, 0.0  ;;  %v450_v12 = vadd.f32 %v1656_v7, %v449_v60 }
 0x14a   : > { %v940_v17 = vmul.f32 %v908_v10, %v876_v5  ;;  %v784_v19 = vmax.f32 %v650_v13, 0.0  ;;  %v454_v20 = vpop.f32.mrb[24].mxu0  ;;  %v1164_v21 = vpop.f32.mrb[24].mxu1  ;;  %v846_v25 = vmax.f32 %v814_v1, 0.0 }
 0x14b   : > { %973 = vst [vmem:[%s1670_s22 + $0x18] sm:$0xff] %v941_v14  ;;  %v817_v26 = vadd.f32 3.0, %v785_v15  ;;  %v456_v27 = vpop.f32.mrb[25].mxu0  ;;  %v659_v28 = vpop.f32.mrb[25].mxu1  ;;  %v879_v29 = vmin.f32 %v847_v18, 6.0  ;;  %v665_v22 = vadd.f32 %v1164_v21, %v440_v16  ;;  %v913_v44 = vadd.f32 1.0, %v785_v15 }
 0x14c   : > { %972 = vst [vmem:[%s1670_s22 + $0x10] sm:$0xff] %v940_v17  ;;  %v816_v31 = vadd.f32 3.0, %v784_v19  ;;  %v878_v32 = vmin.f32 %v846_v25, 6.0  ;;  %v660_v36 = vadd.f32 %v659_v28, %v435_v23  ;;  %v912_v51 = vadd.f32 1.0, %v784_v19 }
 0x14d   : > { %v849_v34 = vmax.f32 %v817_v26, 0.0  ;;  %v943_v37 = vmul.f32 %v911_v30, %v879_v29  ;;  %v787_v35 = vmax.f32 %v665_v22, 0.0  ;;  %v455_v61 = vadd.f32 %v1656_v7, %v454_v20 }
 0x14e   : > { %v848_v38 = vmax.f32 %v816_v31, 0.0  ;;  %v459_v39 = vpop.f32.mrb[26].mxu0  ;;  %v1167_v40 = vpop.f32.mrb[26].mxu1  ;;  %v942_v41 = vmul.f32 %v910_v33, %v878_v32  ;;  %v786_v45 = vmax.f32 %v660_v36, 0.0 }
 0x14f   : > { %v881_v43 = vmin.f32 %v849_v34, 6.0  ;;  %v461_v47 = vpop.f32.mrb[27].mxu0  ;;  %v669_v48 = vpop.f32.mrb[27].mxu1  ;;  %975 = vst [vmem:[%s1670_s22 + $0x28] sm:$0xff] %v943_v37  ;;  %v819_v52 = vadd.f32 3.0, %v787_v35  ;;  %v675_v53 = vadd.f32 %v1167_v40, %v450_v12  ;;  %v460_v57 = vadd.f32 %v1656_v7, %v459_v39 }
 0x150   : > { %v880_v49 = vmin.f32 %v848_v38, 6.0  ;;  %974 = vst [vmem:[%s1670_s22 + $0x20] sm:$0xff] %v942_v41  ;;  %v818_v56 = vadd.f32 3.0, %v786_v45  ;;  %v670_v59 = vadd.f32 %v669_v48, %v445_v24  ;;  %v915_v14 = vadd.f32 1.0, %v787_v35 }
 0x151   : > { %v945_v55 = vmul.f32 %v913_v44, %v881_v43  ;;  %v851_v63 = vmax.f32 %v819_v52, 0.0  ;;  %v789_v0 = vmax.f32 %v675_v53, 0.0  ;;  %v914_v17 = vadd.f32 1.0, %v786_v45 }
 0x152   : > { %v944_v60 = vmul.f32 %v912_v51, %v880_v49  ;;  %v464_v3 = vpop.f32.mrb[28].mxu0  ;;  %v1170_v4 = vpop.f32.mrb[28].mxu1  ;;  %v850_v8 = vmax.f32 %v818_v56, 0.0  ;;  %v788_v9 = vmax.f32 %v670_v59, 0.0 }
 0x153   : > { %977 = vst [vmem:[%s1670_s22 + $0x38] sm:$0xff] %v945_v55  ;;  %v685_v5 = vadd.f32 %v1170_v4, %v460_v57  ;;  %v466_v10 = vpop.f32.mrb[29].mxu0  ;;  %v679_v11 = vpop.f32.mrb[29].mxu1  ;;  %v883_v13 = vmin.f32 %v851_v63, 6.0  ;;  %v821_v1 = vadd.f32 3.0, %v789_v0  ;;  %v465_v28 = vadd.f32 %v1656_v7, %v464_v3 }
 0x154   : > { %976 = vst [vmem:[%s1670_s22 + $0x30] sm:$0xff] %v944_v60  ;;  %v680_v15 = vadd.f32 %v679_v11, %v455_v61  ;;  %v882_v16 = vmin.f32 %v850_v8, 6.0  ;;  %v820_v18 = vadd.f32 3.0, %v788_v9  ;;  %v917_v32 = vadd.f32 1.0, %v789_v0 }
 0x155   : > { %v791_v19 = vmax.f32 %v685_v5, 0.0  ;;  %v947_v20 = vmul.f32 %v915_v14, %v883_v13  ;;  %v853_v21 = vmax.f32 %v821_v1, 0.0  ;;  %v916_v37 = vadd.f32 1.0, %v788_v9 }
 0x156   : > { %v790_v23 = vmax.f32 %v680_v15, 0.0  ;;  %v469_v24 = vpop.f32.mrb[30].mxu0  ;;  %v1173_v25 = vpop.f32.mrb[30].mxu1  ;;  %v946_v26 = vmul.f32 %v914_v17, %v882_v16  ;;  %v852_v27 = vmax.f32 %v820_v18, 0.0 }
 0x157   : > { %v823_v29 = vadd.f32 3.0, %v791_v19  ;;  %v471_v30 = vpop.f32.mrb[31].mxu0  ;;  %v689_v31 = vpop.f32.mrb[31].mxu1  ;;  %979 = vst [vmem:[%s1670_s22 + $0x48] sm:$0xff] %v947_v20  ;;  %v885_v22 = vmin.f32 %v853_v21, 6.0  ;;  %v470_v34 = vadd.f32 %v1656_v7, %v469_v24  ;;  %v919_v39 = vadd.f32 1.0, %v791_v19 }
 0x158   : > { %v822_v33 = vadd.f32 3.0, %v790_v23  ;;  %978 = vst [vmem:[%s1670_s22 + $0x40] sm:$0xff] %v946_v26  ;;  %v884_v36 = vmin.f32 %v852_v27, 6.0  ;;  %v690_v38 = vadd.f32 %v689_v31, %v465_v28  ;;  %v918_v55 = vadd.f32 1.0, %v790_v23 }
 0x159   : > { %v855_v12 = vmax.f32 %v823_v29, 0.0  ;;  %v949_v35 = vmul.f32 %v917_v32, %v885_v22  ;;  %v695_v41 = vadd.f32 %v1173_v25, %v470_v34 }
 0x15a   : > { %v854_v40 = vmax.f32 %v822_v33, 0.0  ;;  %v474_v43 = vpop.f32.mrb[32].mxu0  ;;  %v1176_v44 = vpop.f32.mrb[32].mxu1  ;;  %v948_v45 = vmul.f32 %v916_v37, %v884_v36  ;;  %v792_v48 = vmax.f32 %v690_v38, 0.0 }
 0x15b   : > { %v887_v47 = vmin.f32 %v855_v12, 6.0  ;;  %v475_v49 = vadd.f32 %v1656_v7, %v474_v43  ;;  %v476_v51 = vpop.f32.mrb[33].mxu0  ;;  %v699_v52 = vpop.f32.mrb[33].mxu1  ;;  %981 = vst [vmem:[%s1670_s22 + $0x58] sm:$0xff] %v949_v35  ;;  %v793_v56 = vmax.f32 %v695_v41, 0.0  ;;  %v515_v43 = vadd.f32 %v1656_v7, %v1637_v42 }
 0x15c   : > { %v886_v53 = vmin.f32 %v854_v40, 6.0  ;;  %980 = vst [vmem:[%s1670_s22 + $0x50] sm:$0xff] %v948_v45  ;;  %v824_v59 = vadd.f32 3.0, %v792_v48  ;;  %v920_v14 = vadd.f32 1.0, %v792_v48  ;;  %v525_v45 = vadd.f32 %v1656_v7, %v1641_v50 }
 0x15d   : > { %v951_v57 = vmul.f32 %v919_v39, %v887_v47  ;;  %v700_v60 = vadd.f32 %v699_v52, %v475_v49  ;;  %v825_v63 = vadd.f32 3.0, %v793_v56  ;;  %v921_v17 = vadd.f32 1.0, %v793_v56 }
 0x15e   : > { %v950_v61 = vmul.f32 %v918_v55, %v886_v53  ;;  %v479_v0 = vpop.f32.mrb[34].mxu0  ;;  %v1179_v3 = vpop.f32.mrb[34].mxu1  ;;  %v856_v4 = vmax.f32 %v824_v59, 0.0  ;;  %v1721_v42 = vadd.f32 %v1656_v7, %v1645_v58 }
 0x15f   : > { %983 = vst [vmem:[%s1670_s22 + $0x68] sm:$0xff] %v951_v57  ;;  %v794_v8 = vmax.f32 %v700_v60, 0.0  ;;  %v480_v9 = vadd.f32 %v1656_v7, %v479_v0  ;;  %v481_v5 = vpop.f32.mrb[35].mxu0  ;;  %v709_v10 = vpop.f32.mrb[35].mxu1  ;;  %v857_v11 = vmax.f32 %v825_v63, 0.0  ;;  %v530_v57 = vadd.f32 %v1656_v7, %v1643_v54 }
 0x160   : > { %982 = vst [vmem:[%s1670_s22 + $0x60] sm:$0xff] %v950_v61  ;;  %v888_v13 = vmin.f32 %v856_v4, 6.0  ;;  %v540_v0 = vadd.f32 %v1656_v7, %v1647_v62 }
 0x161   : > { %v826_v1 = vadd.f32 3.0, %v794_v8  ;;  %v705_v15 = vadd.f32 %v1176_v44, %v480_v9  ;;  %v889_v16 = vmin.f32 %v857_v11, 6.0  ;;  %v922_v29 = vadd.f32 1.0, %v794_v8 }
 0x162   : > { %v484_v18 = vpop.f32.mrb[36].mxu0  ;;  %v1699_v19 = vpop.f32.mrb[36].mxu1  ;;  %v952_v20 = vmul.f32 %v920_v14, %v888_v13  ;;  %v520_v44 = vadd.f32 %v1656_v7, %v1639_v46 }
 0x163   : > { %v858_v21 = vmax.f32 %v826_v1, 0.0  ;;  %v795_v23 = vmax.f32 %v705_v15, 0.0  ;;  %v485_v24 = vadd.f32 %v1656_v7, %v484_v18  ;;  %v486_v25 = vpop.f32.mrb[37].mxu0  ;;  %v719_v26 = vpop.f32.mrb[37].mxu1  ;;  %v953_v27 = vmul.f32 %v921_v17, %v889_v16 }
 0x164   : > { %984 = vst [vmem:[%s1670_s22 + $0x70] sm:$0xff] %v952_v20 }
 0x165   : > { %v890_v28 = vmin.f32 %v858_v21, 6.0  ;;  %v827_v30 = vadd.f32 3.0, %v795_v23  ;;  %v710_v31 = vadd.f32 %v709_v10, %v485_v24  ;;  %985 = vst [vmem:[%s1670_s22 + $0x78] sm:$0xff] %v953_v27  ;;  %v923_v39 = vadd.f32 1.0, %v795_v23 }
 0x166   : > { %v489_v22 = vpop.f32.mrb[38].mxu0  ;;  %v1704_v32 = vpop.f32.mrb[38].mxu1 }
 0x167   : > { %v954_v33 = vmul.f32 %v922_v29, %v890_v28  ;;  %v859_v34 = vmax.f32 %v827_v30, 0.0  ;;  %v796_v36 = vmax.f32 %v710_v31, 0.0  ;;  %v490_v37 = vadd.f32 %v1656_v7, %v489_v22  ;;  %v491_v12 = vpop.f32.mrb[39].mxu0  ;;  %v1707_v38 = vpop.f32.mrb[39].mxu1 }
 0x169   : > { %986 = vst [vmem:[%s1670_s22 + $0x80] sm:$0xff] %v954_v33  ;;  %v891_v35 = vmin.f32 %v859_v34, 6.0  ;;  %v828_v40 = vadd.f32 3.0, %v796_v36  ;;  %v715_v41 = vadd.f32 %v1179_v3, %v490_v37  ;;  %v924_v60 = vadd.f32 1.0, %v796_v36 }
 0x16a   : > { %v494_v47 = vpop.f32.mrb[40].mxu0  ;;  %v1188_v48 = vpop.f32.mrb[40].mxu1  ;;  %v1728_v3 = vadd.f32 %v1656_v7, %v1651_v6 }
 0x16b   : > { %v955_v49 = vmul.f32 %v923_v39, %v891_v35  ;;  %v860_v51 = vmax.f32 %v828_v40, 0.0  ;;  %v797_v52 = vmax.f32 %v715_v41, 0.0  ;;  %v495_v53 = vadd.f32 %v1656_v7, %v494_v47  ;;  %v496_v55 = vpop.f32.mrb[41].mxu0  ;;  %v739_v56 = vpop.f32.mrb[41].mxu1 }
 0x16c   : > { %v745_v46 = vadd.f32 %v1188_v48, %v520_v44  ;;  %v740_v59 = vadd.f32 %v739_v56, %v515_v43 }
 0x16d   : > { %987 = vst [vmem:[%s1670_s22 + $0x88] sm:$0xff] %v955_v49  ;;  %v892_v50 = vmin.f32 %v860_v51, 6.0  ;;  %v829_v61 = vadd.f32 3.0, %v797_v52  ;;  %v720_v63 = vadd.f32 %v719_v26, %v495_v53  ;;  %v925_v1 = vadd.f32 1.0, %v797_v52 }
 0x16e   : > { %v803_v54 = vmax.f32 %v745_v46, 0.0  ;;  %v802_v4 = vmax.f32 %v740_v59, 0.0  ;;  %v499_v8 = vpop.f32.mrb[42].mxu0  ;;  %v1191_v58 = vpop.f32.mrb[42].mxu1 }
 0x16f   : > { %v956_v9 = vmul.f32 %v924_v60, %v892_v50  ;;  %v861_v5 = vmax.f32 %v829_v61, 0.0  ;;  %v798_v10 = vmax.f32 %v720_v63, 0.0  ;;  %v500_v11 = vadd.f32 %v1656_v7, %v499_v8  ;;  %v501_v13 = vpop.f32.mrb[43].mxu0  ;;  %v749_v14 = vpop.f32.mrb[43].mxu1 }
 0x170   : > { %v835_v15 = vadd.f32 3.0, %v803_v54  ;;  %v931_v16 = vadd.f32 1.0, %v803_v54  ;;  %v834_v62 = vadd.f32 3.0, %v802_v4  ;;  %v930_v6 = vadd.f32 1.0, %v802_v4 }
 0x171   : > { %988 = vst [vmem:[%s1670_s22 + $0x90] sm:$0xff] %v956_v9  ;;  %v893_v17 = vmin.f32 %v861_v5, 6.0  ;;  %v830_v18 = vadd.f32 3.0, %v798_v10  ;;  %v725_v20 = vadd.f32 %v1699_v19, %v500_v11  ;;  %v755_v24 = vadd.f32 %v1191_v58, %v530_v57 }
 0x172   : > { %v867_v21 = vmax.f32 %v835_v15, 0.0  ;;  %v866_v23 = vmax.f32 %v834_v62, 0.0  ;;  %v750_v25 = vadd.f32 %v749_v14, %v525_v45  ;;  %v504_v26 = vpop.f32.mrb[44].mxu0  ;;  %v1194_v27 = vpop.f32.mrb[44].mxu1  ;;  %v926_v35 = vadd.f32 1.0, %v798_v10 }
 0x173   : > { %v957_v28 = vmul.f32 %v925_v1, %v893_v17  ;;  %v862_v29 = vmax.f32 %v830_v18, 0.0  ;;  %v799_v30 = vmax.f32 %v725_v20, 0.0  ;;  %v505_v31 = vadd.f32 %v1656_v7, %v504_v26  ;;  %v506_v22 = vpop.f32.mrb[45].mxu0  ;;  %v759_v33 = vpop.f32.mrb[45].mxu1 }
 0x174   : > { %v899_v34 = vmin.f32 %v867_v21, 6.0  ;;  %v898_v36 = vmin.f32 %v866_v23, 6.0  ;;  %v805_v37 = vmax.f32 %v755_v24, 0.0  ;;  %v804_v12 = vmax.f32 %v750_v25, 0.0 }
 0x175   : > { %989 = vst [vmem:[%s1670_s22 + $0x98] sm:$0xff] %v957_v28  ;;  %v894_v19 = vmin.f32 %v862_v29, 6.0  ;;  %v831_v39 = vadd.f32 3.0, %v799_v30  ;;  %v730_v40 = vadd.f32 %v1707_v38, %v505_v31  ;;  %v927_v44 = vadd.f32 1.0, %v799_v30 }
 0x176   : > { %v963_v41 = vmul.f32 %v931_v16, %v899_v34  ;;  %v962_v43 = vmul.f32 %v930_v6, %v898_v36  ;;  %v837_v45 = vadd.f32 3.0, %v805_v37  ;;  %v509_v47 = vpop.f32.mrb[46].mxu0  ;;  %v1197_v48 = vpop.f32.mrb[46].mxu1  ;;  %v933_v52 = vadd.f32 1.0, %v805_v37 }
 0x177   : > { %v958_v49 = vmul.f32 %v926_v35, %v894_v19  ;;  %v863_v51 = vmax.f32 %v831_v39, 0.0  ;;  %v836_v53 = vadd.f32 3.0, %v804_v12  ;;  %v511_v55 = vpop.f32.mrb[47].mxu0  ;;  %v769_v56 = vpop.f32.mrb[47].mxu1  ;;  %v800_v46 = vmax.f32 %v730_v40, 0.0 }
 0x178   : > { %995 = vst [vmem:[%s1670_s22 + $0xc8] sm:$0xff] %v963_v41  ;;  %994 = vst [vmem:[%s1670_s22 + $0xc0] sm:$0xff] %v962_v43  ;;  %v869_v57 = vmax.f32 %v837_v45, 0.0  ;;  %v765_v59 = vadd.f32 %v1194_v27, %v540_v0  ;;  %v760_v38 = vadd.f32 %v759_v33, %v1721_v42  ;;  %v510_v61 = vadd.f32 %v1656_v7, %v509_v47 }
 0x179   : > { %990 = vst [vmem:[%s1670_s22 + $0xa0] sm:$0xff] %v958_v49  ;;  %v895_v50 = vmin.f32 %v863_v51, 6.0  ;;  %v868_v60 = vmax.f32 %v836_v53, 0.0  ;;  %v775_v63 = vadd.f32 %v1197_v48, %v1728_v3  ;;  %v932_v4 = vadd.f32 1.0, %v804_v12 }
 0x17a   : > { %v901_v54 = vmin.f32 %v869_v57, 6.0  ;;  %v832_v8 = vadd.f32 3.0, %v800_v46  ;;  %v807_v58 = vmax.f32 %v765_v59, 0.0  ;;  %v806_v10 = vmax.f32 %v760_v38, 0.0 }
 0x17b   : > { %v959_v9 = vmul.f32 %v927_v44, %v895_v50  ;;  %v900_v5 = vmin.f32 %v868_v60, 6.0  ;;  %v735_v0 = vadd.f32 %v1704_v32, %v510_v61  ;;  %v545_v42 = vadd.f32 %v1656_v7, %v1649_v2 }
 0x17c   : > { %v965_v11 = vmul.f32 %v933_v52, %v901_v54  ;;  %v864_v13 = vmax.f32 %v832_v8, 0.0  ;;  %v839_v14 = vadd.f32 3.0, %v807_v58  ;;  %v928_v3 = vadd.f32 1.0, %v800_v46 }
 0x17d   : > { %991 = vst [vmem:[%s1670_s22 + $0xa8] sm:$0xff] %v959_v9  ;;  %v964_v1 = vmul.f32 %v932_v4, %v900_v5  ;;  %v838_v15 = vadd.f32 3.0, %v806_v10  ;;  %v801_v16 = vmax.f32 %v735_v0, 0.0  ;;  %v809_v18 = vmax.f32 %v775_v63, 0.0 }
 0x17e   : > { %997 = vst [vmem:[%s1670_s22 + $0xd8] sm:$0xff] %v965_v11  ;;  %v896_v62 = vmin.f32 %v864_v13, 6.0  ;;  %v871_v17 = vmax.f32 %v839_v14, 0.0  ;;  %v770_v6 = vadd.f32 %v769_v56, %v545_v42  ;;  %v935_v7 = vadd.f32 1.0, %v807_v58 }
 0x17f   : > { %996 = vst [vmem:[%s1670_s22 + $0xd0] sm:$0xff] %v964_v1  ;;  %v870_v20 = vmax.f32 %v838_v15, 0.0  ;;  %v833_v32 = vadd.f32 3.0, %v801_v16  ;;  %v841_v23 = vadd.f32 3.0, %v809_v18  ;;  %v934_v25 = vadd.f32 1.0, %v806_v10 }
 0x180   : > { %v960_v21 = vmul.f32 %v928_v3, %v896_v62  ;;  %v903_v2 = vmin.f32 %v871_v17, 6.0  ;;  %v808_v27 = vmax.f32 %v770_v6, 0.0  ;;  %v929_v22 = vadd.f32 1.0, %v801_v16 }
 0x181   : > { %v902_v24 = vmin.f32 %v870_v20, 6.0  ;;  %v865_v26 = vmax.f32 %v833_v32, 0.0  ;;  %v873_v29 = vmax.f32 %v841_v23, 0.0  ;;  %v937_v36 = vadd.f32 1.0, %v809_v18 }
 0x182   : > { %992 = vst [vmem:[%s1670_s22 + $0xb0] sm:$0xff] %v960_v21  ;;  %v967_v28 = vmul.f32 %v935_v7, %v903_v2  ;;  %v840_v33 = vadd.f32 3.0, %v808_v27  ;;  %v936_v39 = vadd.f32 1.0, %v808_v27 }
 0x183   : > { %v966_v30 = vmul.f32 %v934_v25, %v902_v24  ;;  %v897_v31 = vmin.f32 %v865_v26, 6.0  ;;  %v905_v34 = vmin.f32 %v873_v29, 6.0 }
 0x184   : > { %999 = vst [vmem:[%s1670_s22 + $0xe8] sm:$0xff] %v967_v28  ;;  %v872_v12 = vmax.f32 %v840_v33, 0.0 }
 0x185   : > { %998 = vst [vmem:[%s1670_s22 + $0xe0] sm:$0xff] %v966_v30  ;;  %v961_v37 = vmul.f32 %v929_v22, %v897_v31  ;;  %v969_v19 = vmul.f32 %v937_v36, %v905_v34 }
 0x186   : > { %v904_v35 = vmin.f32 %v872_v12, 6.0 }
 0x187   : > { %993 = vst [vmem:[%s1670_s22 + $0xb8] sm:$0xff] %v961_v37  ;;  %1001 = vst [vmem:[%s1670_s22 + $0xf8] sm:$0xff] %v969_v19 }
 0x188   : > { %v968_v40 = vmul.f32 %v936_v39, %v904_v35 }
 0x18a   : > { %1000 = vst [vmem:[%s1670_s22 + $0xf0] sm:$0xff] %v968_v40 }
 0x18b PF: > { %s13_s12 = sadd.s32 1, %s1326_s12  }
 0x18c   : > { %p10_p4 = scmp.ge.s32.totalorder %s13_s12, 4  }
 0x18e   :  { %12 = sbr.rel (!%p10_p4) target bundleno = 1 (0x1), region = 62 }

</bundles_post_ra>
